<compile_context>
chip_gen: v7x
topology: tpu7x:2x2x1
jax: 0.10.0
libtpu: 0.0.40
codegen_flags: <defaults>
</compile_context>

<pallas_src>
import jax
import jax.numpy as jnp
from jax.experimental import pallas as pl
from jax.experimental.pallas import tpu as pltpu


def _actionnet_kernel(x_ref, w1_ref, w2_ref, b_ref, o_ref):
    out_dim = w2_ref.shape[1]

    b = b_ref[...]                        # (2, hidden) f32 packed biases
    b1 = b[0:1, :]                        # (1, hidden)
    b2 = b[1:2, :out_dim]                 # (1, out_dim)

    # bf16 MXU path, f32 accumulation.
    x = x_ref[...].astype(jnp.bfloat16)
    h = jnp.dot(x, w1_ref[...], preferred_element_type=jnp.float32) + b1
    h = jnp.maximum(h, 0.0).astype(jnp.bfloat16)
    out = jnp.dot(h, w2_ref[...], preferred_element_type=jnp.float32) + b2
    o_ref[...] = out.astype(o_ref.dtype)


def actionnet_forward(x, w1, w2, b_packed, *, block_b=256):
    """x: (B, in_dim) f32; w1: (in_dim, hidden) bf16; w2: (hidden, out_dim) bf16;
    b_packed: (2, hidden) f32 with row 0 = b1, row 1[:out_dim] = b2.
    Returns (B, out_dim) f32."""
    B, in_dim = x.shape
    hidden = w1.shape[1]
    out_dim = w2.shape[1]
    assert w1.shape == (in_dim, hidden)
    assert w2.shape == (hidden, out_dim)
    assert b_packed.shape == (2, hidden)

    cost = pl.CostEstimate(
        flops=2 * B * (in_dim * hidden + hidden * out_dim),
        transcendentals=0,
        bytes_accessed=(x.size * x.dtype.itemsize
                        + w1.size * w1.dtype.itemsize
                        + w2.size * w2.dtype.itemsize
                        + b_packed.size * b_packed.dtype.itemsize
                        + B * out_dim * 4),
    )
    out_shape = jax.ShapeDtypeStruct((B, out_dim), jnp.float32)

    if B <= block_b:
        # Single shot: no grid, no pipeline bookkeeping, operands resident in VMEM.
        vmem = pl.BlockSpec(memory_space=pltpu.MemorySpace.VMEM)
        return pl.pallas_call(
            _actionnet_kernel,
            out_shape=out_shape,
            in_specs=[vmem, vmem, vmem, vmem],
            out_specs=vmem,
            cost_estimate=cost,
        )(x, w1, w2, b_packed)

    # Large batch: tile the batch dimension only. Weight/bias index_maps are
    # constant, so their tiles stay resident in VMEM across grid steps; the
    # batch axis is "parallel" so v7x can shard it across both TensorCores.
    grid = (pl.cdiv(B, block_b),)
    return pl.pallas_call(
        _actionnet_kernel,
        out_shape=out_shape,
        grid=grid,
        in_specs=[
            pl.BlockSpec((block_b, in_dim), lambda i: (i, 0)),
            pl.BlockSpec((in_dim, hidden), lambda i: (0, 0)),
            pl.BlockSpec((hidden, out_dim), lambda i: (0, 0)),
            pl.BlockSpec((2, hidden), lambda i: (0, 0)),
        ],
        out_specs=pl.BlockSpec((block_b, out_dim), lambda i: (i, 0)),
        compiler_params=pltpu.CompilerParams(dimension_semantics=("parallel",)),
        cost_estimate=cost,
    )(x, w1, w2, b_packed)


def init_params(key, in_dim, hidden, out_dim):
    """Deterministic init mimicking PyTorch Linear default (uniform +/- 1/sqrt(fan_in))."""
    k1, k2, k3, k4 = jax.random.split(key, 4)
    lim1 = 1.0 / (in_dim ** 0.5)
    lim2 = 1.0 / (hidden ** 0.5)
    w1 = jax.random.uniform(k1, (in_dim, hidden), jnp.float32, -lim1, lim1)
    b1 = jax.random.uniform(k2, (hidden,), jnp.float32, -lim1, lim1)
    w2 = jax.random.uniform(k3, (hidden, out_dim), jnp.float32, -lim2, lim2)
    b2 = jax.random.uniform(k4, (out_dim,), jnp.float32, -lim2, lim2)
    return w1, b1, w2, b2


if __name__ == "__main__":
    # Module defaults: in_dim = 5*5*32 = 800, hidden = in_dim // 4 = 200, out_dim = 3
    in_dim = 5 * 5 * 32
    hidden = in_dim // 4
    out_dim = 3

    key = jax.random.PRNGKey(0)
    kx, kp = jax.random.split(key)
    w1_f32, b1, w2_f32, b2 = init_params(kp, in_dim, hidden, out_dim)

    # bf16 weights (halve the dominant w1 DMA); biases packed into one f32 array.
    w1 = w1_f32.astype(jnp.bfloat16)
    w2 = w2_f32.astype(jnp.bfloat16)
    b_packed = jnp.zeros((2, hidden), jnp.float32)
    b_packed = b_packed.at[0, :].set(b1)
    b_packed = b_packed.at[1, :out_dim].set(b2)

    def ref_fn(xv):
        # Reference uses the same bf16-rounded weights (upcast to f32), so the
        # only difference vs. the kernel is the in-kernel bf16 activation casts.
        h = jnp.maximum(xv @ w1.astype(jnp.float32) + b1, 0.0)
        return h @ w2.astype(jnp.float32) + b2

    # Small-batch / low-latency path (no grid).
    B_small = 8
    x_small = jax.random.normal(kx, (B_small, in_dim), jnp.float32)
    out_small = jax.block_until_ready(actionnet_forward(x_small, w1, w2, b_packed))
    assert out_small.shape == (B_small, out_dim)
    assert jnp.allclose(out_small, ref_fn(x_small), atol=3e-2, rtol=3e-2), \
        "small-batch mismatch vs reference"

    # Batched throughput path (grid over batch tiles, weights stay resident).
    B_big = 512
    x_big = jax.random.normal(kx, (B_big, in_dim), jnp.float32)
    out_big = jax.block_until_ready(
        actionnet_forward(x_big, w1, w2, b_packed, block_b=256))
    assert out_big.shape == (B_big, out_dim)
    assert jnp.allclose(out_big, ref_fn(x_big), atol=3e-2, rtol=3e-2), \
        "batched mismatch vs reference"

    print("KERNEL_OK")
</pallas_src>

<mosaic_0001>
module attributes {stable_mosaic.version = 11 : i64} {
  func.func @_actionnet_kernel(%arg0: memref<8x800xf32, #tpu.memory_space<vmem>>, %arg1: memref<800x200xbf16, #tpu.memory_space<vmem>>, %arg2: memref<200x3xbf16, #tpu.memory_space<vmem>>, %arg3: memref<2x200xf32, #tpu.memory_space<vmem>>, %arg4: memref<8x3xf32, #tpu.memory_space<vmem>>) attributes {dimension_semantics = [], scalar_prefetch = 0 : i64, scratch_operands = 0 : i64, tpu.core_type = #tpu.core_type<tc>} {
    %c0 = arith.constant 0 : index
    %c0_0 = arith.constant 0 : index
    %0 = vector.load %arg3[%c0, %c0_0] : memref<2x200xf32, #tpu.memory_space<vmem>>, vector<2x200xf32>
    %1 = vector.extract_strided_slice %0 {offsets = [0, 0], sizes = [1, 200], strides = [1, 1]} : vector<2x200xf32> to vector<1x200xf32>
    %2 = vector.extract_strided_slice %0 {offsets = [1, 0], sizes = [1, 3], strides = [1, 1]} : vector<2x200xf32> to vector<1x3xf32>
    %c0_1 = arith.constant 0 : index
    %c0_2 = arith.constant 0 : index
    %3 = vector.load %arg0[%c0_1, %c0_2] : memref<8x800xf32, #tpu.memory_space<vmem>>, vector<8x800xf32>
    %4 = arith.truncf %3 : vector<8x800xf32> to vector<8x800xbf16>
    %c0_3 = arith.constant 0 : index
    %c0_4 = arith.constant 0 : index
    %5 = vector.load %arg1[%c0_3, %c0_4] : memref<800x200xbf16, #tpu.memory_space<vmem>>, vector<800x200xbf16>
    %cst = arith.constant dense<0.000000e+00> : vector<8x200xf32>
    %6 = tpu.matmul %4, %5, %cst {dimension_numbers = #tpu.dot_dimension_numbers<[1], [0], [0], [1], [0, 0, 1, 1], [], []>} : vector<8x800xbf16>, vector<800x200xbf16>, vector<8x200xf32> -> vector<8x200xf32>
    %7 = vector.broadcast %1 : vector<1x200xf32> to vector<8x200xf32>
    %8 = arith.addf %6, %7 : vector<8x200xf32>
    %cst_5 = arith.constant 0.000000e+00 : f32
    %9 = vector.broadcast %cst_5 : f32 to vector<8x200xf32>
    %10 = arith.maximumf %8, %9 : vector<8x200xf32>
    %11 = arith.truncf %10 : vector<8x200xf32> to vector<8x200xbf16>
    %c0_6 = arith.constant 0 : index
    %c0_7 = arith.constant 0 : index
    %12 = vector.load %arg2[%c0_6, %c0_7] : memref<200x3xbf16, #tpu.memory_space<vmem>>, vector<200x3xbf16>
    %cst_8 = arith.constant dense<0.000000e+00> : vector<8x3xf32>
    %13 = tpu.matmul %11, %12, %cst_8 {dimension_numbers = #tpu.dot_dimension_numbers<[1], [0], [0], [1], [0, 0, 1, 1], [], []>} : vector<8x200xbf16>, vector<200x3xbf16>, vector<8x3xf32> -> vector<8x3xf32>
    %14 = vector.broadcast %2 : vector<1x3xf32> to vector<8x3xf32>
    %15 = arith.addf %13, %14 : vector<8x3xf32>
    %c0_9 = arith.constant 0 : index
    %c0_10 = arith.constant 0 : index
    %16 = vector.load %arg4[%c0_9, %c0_10] : memref<8x3xf32, #tpu.memory_space<vmem>>, vector<8x3xf32>
    tpu.vector_store %arg4[%c0_9, %c0_10], %15 {strides = array<i32>} : memref<8x3xf32, #tpu.memory_space<vmem>>, vector<8x3xf32>,
    return
  }
}

</mosaic_0001>

<bundles_post_ra>
// kernel: tpu_custom_call.1
= control target key start
LH: loop header
LB: loop body
LE: loop exit
PB: predicated region body
PF: predicated region fallthrough
CT: control target
= control target key end

     0   :  { %vm652_vm0 = vcmask 261120   ;;  %vm932_vm1 = vcmask 1043456   ;;  %vm928_vm2 = vcmask 588800   ;;  %vm976_vm3 = vcmask 23552   ;;  %s1677_s1 = inlined_call_operand.vmem [shape: bf16[800,200], index: 1, kind: input, shape index: {}]   ;;  %s1678_s0 = inlined_call_operand.vmem [shape: f32[8,800], index: 0, kind: input, shape index: {}]   ;;  %s1679_s2 = inlined_call_operand.vmem [shape: bf16[200,3], index: 2, kind: input, shape index: {}]   ;;  %s1680_s3 = inlined_call_operand.vmem [shape: f32[2,200], index: 3, kind: input, shape index: {}]   ;;  %s1681_s4 = inlined_call_operand.vmem [shape: f32[8,3], index: 4, kind: output, shape index: {}]  }
   0x1   :  { %v1108_v0 = vld [vmem:[%s1677_s1 + $0x104] ss:$8 sps:$4 sm:$0xff]   ;;  %v1110_v1 = vld [vmem:[%s1677_s1 + $0x100] ss:$8 sps:$4 sm:$0xff]   ;;  %v1111_v2 = vld [vmem:[%s1677_s1 + $0x114] ss:$8 sps:$4 sm:$0xff]  }
   0x2   :  { %697 = vmatprep.subr.bf16.mxu0 %v1108_v0  ;;  %v1113_v3 = vld [vmem:[%s1677_s1 + $0x110] ss:$8 sps:$4 sm:$0xff]   ;;  %v1114_v4 = vld [vmem:[%s1677_s1 + $0x124] ss:$8 sps:$4 sm:$0xff]   ;;  %v1116_v5 = vld [vmem:[%s1677_s1 + $0x120] ss:$8 sps:$4 sm:$0xff]  }
   0x3   :  { %698 = vmatpush1.bf16.msra.mxu0 %v1110_v1  ;;  %v1117_v6 = vld [vmem:[%s1677_s1 + $0x134] ss:$8 sps:$4 sm:$0xff]   ;;  %v1119_v7 = vld [vmem:[%s1677_s1 + $0x130] ss:$8 sps:$4 sm:$0xff]   ;;  %v1120_v8 = vld [vmem:[%s1677_s1 + $0x144] ss:$8 sps:$4 sm:$0xff]  }
   0x4   :  { %699 = vmatprep.subr.bf16.mxu0 %v1111_v2  ;;  %v1122_v9 = vld [vmem:[%s1677_s1 + $0x140] ss:$8 sps:$4 sm:$0xff]   ;;  %v1123_v10 = vld [vmem:[%s1677_s1 + $0x154] ss:$8 sps:$4 sm:$0xff]   ;;  %v1125_v11 = vld [vmem:[%s1677_s1 + $0x150] ss:$8 sps:$4 sm:$0xff]  }
   0x5   :  { %v1150_v12 = vld [vmem:[%s1677_s1 + $0x4] ss:$8 sps:$4 sm:$0xff]   ;;  %v1152_v13 = vld [vmem:[%s1677_s1] ss:$8 sps:$4 sm:$0xff]   ;;  %v1156_v15 = vld [vmem:[%s1677_s1 + $0x14] ss:$8 sps:$4 sm:$0xff]  }
   0x6   :  { %v1126_v14 = vld [vmem:[%s1677_s1 + $0x164] ss:$8 sps:$4 sm:$0xff]   ;;  %656 = vmatprep.subr.bf16.mxu1 %v1150_v12  ;;  %v1158_v16 = vld [vmem:[%s1677_s1 + $0x10] ss:$8 sps:$4 sm:$0xff]   ;;  %v1128_v17 = vld [vmem:[%s1677_s1 + $0x160] ss:$8 sps:$4 sm:$0xff]  }
   0x7   :  { %700 = vmatpush1.bf16.msra.mxu0 %v1113_v3  ;;  %657 = vmatpush1.bf16.msra.mxu1 %v1152_v13  ;;  %v1129_v18 = vld [vmem:[%s1677_s1 + $0x174] ss:$8 sps:$4 sm:$0xff]   ;;  %v1162_v19 = vld [vmem:[%s1677_s1 + $0x24] ss:$8 sps:$4 sm:$0xff]   ;;  %v1164_v21 = vld [vmem:[%s1677_s1 + $0x20] ss:$8 sps:$4 sm:$0xff]  }
   0x8   :  { %701 = vmatprep.subr.bf16.mxu0 %v1114_v4  ;;  %658 = vmatprep.subr.bf16.mxu1 %v1156_v15  ;;  %v22_v20 = vld [vmem:[%s1678_s0 + $0x18] sm:$0xff]  ;;  %v1132_v24 = vld [vmem:[%s1677_s1 + $0x184] ss:$8 sps:$4 sm:$0xff]   ;;  %v1134_v26 = vld [vmem:[%s1677_s1 + $0x180] ss:$8 sps:$4 sm:$0xff]  }
   0x9   :  { %v29_v22 = vpack.c.bf16 %v22_v20, %v22_v20  ;;  %v1131_v23 = vld [vmem:[%s1677_s1 + $0x170] ss:$8 sps:$4 sm:$0xff]   ;;  %v1168_v25 = vld [vmem:[%s1677_s1 + $0x34] ss:$8 sps:$4 sm:$0xff]   ;;  %v1174_v28 = vld [vmem:[%s1677_s1 + $0x44] ss:$8 sps:$4 sm:$0xff]  }
   0xa   :  { %v1170_v27 = vld [vmem:[%s1677_s1 + $0x30] ss:$8 sps:$4 sm:$0xff]   ;;  %v1135_v29 = vld [vmem:[%s1677_s1 + $0x194] ss:$8 sps:$4 sm:$0xff]   ;;  %v1176_v31 = vld [vmem:[%s1677_s1 + $0x40] ss:$8 sps:$4 sm:$0xff]  }
   0xb   :  { %702 = vmatpush1.bf16.msra.mxu0 %v1116_v5  ;;  %659 = vmatpush1.bf16.msra.mxu1 %v1158_v16  ;;  %v1137_v30 = vld [vmem:[%s1677_s1 + $0x190] ss:$8 sps:$4 sm:$0xff]   ;;  %v1180_v32 = vld [vmem:[%s1677_s1 + $0x54] ss:$8 sps:$4 sm:$0xff]   ;;  %v1138_v33 = vld [vmem:[%s1677_s1 + $0x1a4] ss:$8 sps:$4 sm:$0xff]  }
   0xc   :  { %703 = vmatprep.subr.bf16.mxu0 %v1117_v6  ;;  %660 = vmatprep.subr.bf16.mxu1 %v1162_v19  ;;  %v1140_v34 = vld [vmem:[%s1677_s1 + $0x1a0] ss:$8 sps:$4 sm:$0xff]   ;;  %v1182_v35 = vld [vmem:[%s1677_s1 + $0x50] ss:$8 sps:$4 sm:$0xff]   ;;  %v1186_v36 = vld [vmem:[%s1677_s1 + $0x64] ss:$8 sps:$4 sm:$0xff]  }
   0xd   :  { %729 = vmatprep.mubr.bf16.mxu0 %v29_v22  ;;  %v1141_v37 = vld [vmem:[%s1677_s1 + $0x1b4] ss:$8 sps:$4 sm:$0xff]   ;;  %v1143_v38 = vld [vmem:[%s1677_s1 + $0x1b0] ss:$8 sps:$4 sm:$0xff]   ;;  %v1188_v39 = vld [vmem:[%s1677_s1 + $0x60] ss:$8 sps:$4 sm:$0xff]  }
   0xe   :  { %v1192_v40 = vld [vmem:[%s1677_s1 + $0x74] ss:$8 sps:$4 sm:$0xff]   ;;  %v1144_v41 = vld [vmem:[%s1677_s1 + $0x1c4] ss:$8 sps:$4 sm:$0xff]   ;;  %v1146_v42 = vld [vmem:[%s1677_s1 + $0x1c0] ss:$8 sps:$4 sm:$0xff]  }
   0xf   :  { %704 = vmatpush1.bf16.msra.mxu0 %v1119_v7  ;;  %661 = vmatpush1.bf16.msra.mxu1 %v1164_v21  ;;  %v1194_v43 = vld [vmem:[%s1677_s1 + $0x70] ss:$8 sps:$4 sm:$0xff]   ;;  %v1198_v44 = vld [vmem:[%s1677_s1 + $0x84] ss:$8 sps:$4 sm:$0xff]   ;;  %v1147_v45 = vld [vmem:[%s1677_s1 + $0x1d4] ss:$8 sps:$4 sm:$0xff]  }
  0x10   :  { %705 = vmatprep.subr.bf16.mxu0 %v1120_v8  ;;  %662 = vmatprep.subr.bf16.mxu1 %v1168_v25  ;;  %v1149_v46 = vld [vmem:[%s1677_s1 + $0x1d0] ss:$8 sps:$4 sm:$0xff]   ;;  %v1200_v47 = vld [vmem:[%s1677_s1 + $0x80] ss:$8 sps:$4 sm:$0xff]   ;;  %v1204_v48 = vld [vmem:[%s1677_s1 + $0x94] ss:$8 sps:$4 sm:$0xff]  }
  0x11   :  { %v1153_v49 = vld [vmem:[%s1677_s1 + $0x1e4] ss:$8 sps:$4 sm:$0xff]   ;;  %v1155_v50 = vld [vmem:[%s1677_s1 + $0x1e0] ss:$8 sps:$4 sm:$0xff]   ;;  %v1206_v51 = vld [vmem:[%s1677_s1 + $0x90] ss:$8 sps:$4 sm:$0xff]  }
  0x12   :  { %v1210_v52 = vld [vmem:[%s1677_s1 + $0xa4] ss:$8 sps:$4 sm:$0xff]   ;;  %v1159_v53 = vld [vmem:[%s1677_s1 + $0x1f4] ss:$8 sps:$4 sm:$0xff]   ;;  %v1161_v54 = vld [vmem:[%s1677_s1 + $0x1f0] ss:$8 sps:$4 sm:$0xff]  }
  0x13   :  { %706 = vmatpush1.bf16.msra.mxu0 %v1122_v9  ;;  %663 = vmatpush1.bf16.msra.mxu1 %v1170_v27  ;;  %v21_v55 = vld [vmem:[%s1678_s0 + $0x10] sm:$0xff]  ;;  %v1212_v56 = vld [vmem:[%s1677_s1 + $0xa0] ss:$8 sps:$4 sm:$0xff]   ;;  %v1167_v58 = vld [vmem:[%s1677_s1 + $0x204] ss:$8 sps:$4 sm:$0xff]   ;;  %v1271_v27 = vmov 0  }
  0x14   :  { %707 = vmatprep.subr.bf16.mxu0 %v1123_v10  ;;  %664 = vmatprep.subr.bf16.mxu1 %v1174_v28  ;;  %v1216_v57 = vld [vmem:[%s1677_s1 + $0xb4] ss:$8 sps:$4 sm:$0xff]   ;;  %v28_v59 = vpack.c.bf16 %v21_v55, %v21_v55  ;;  %v1218_v60 = vld [vmem:[%s1677_s1 + $0xb0] ss:$8 sps:$4 sm:$0xff]   ;;  %v20_v61 = vld [vmem:[%s1678_s0 + $0x8] sm:$0xff] }
  0x15   :  { %v1165_v62 = vld [vmem:[%s1677_s1 + $0x200] ss:$8 sps:$4 sm:$0xff]   ;;  %v1222_v63 = vld [vmem:[%s1677_s1 + $0xc4] ss:$8 sps:$4 sm:$0xff]   ;;  %v27_v0 = vpack.c.bf16 %v20_v61, %v20_v61  ;;  %v1173_v1 = vld [vmem:[%s1677_s1 + $0x214] ss:$8 sps:$4 sm:$0xff]  }
  0x16   :  { %v1224_v2 = vld [vmem:[%s1677_s1 + $0xc0] ss:$8 sps:$4 sm:$0xff]   ;;  %v1171_v3 = vld [vmem:[%s1677_s1 + $0x210] ss:$8 sps:$4 sm:$0xff]   ;;  %v1228_v4 = vld [vmem:[%s1677_s1 + $0xd4] ss:$8 sps:$4 sm:$0xff]  }
  0x17   :  { %708 = vmatpush1.bf16.msra.mxu0 %v1125_v11  ;;  %665 = vmatpush1.bf16.msra.mxu1 %v1176_v31  ;;  %v1179_v5 = vld [vmem:[%s1677_s1 + $0x224] ss:$8 sps:$4 sm:$0xff]   ;;  %v1177_v7 = vld [vmem:[%s1677_s1 + $0x220] ss:$8 sps:$4 sm:$0xff]   ;;  %v1230_v9 = vld [vmem:[%s1677_s1 + $0xd0] ss:$8 sps:$4 sm:$0xff]  }
  0x18   :  { %709 = vmatprep.subr.bf16.mxu0 %v1126_v14  ;;  %666 = vmatprep.subr.bf16.mxu1 %v1180_v32  ;;  %v24_v6 = vld [vmem:[%s1678_s0 + $0x28] sm:$0xff]  ;;  %v1185_v11 = vld [vmem:[%s1677_s1 + $0x234] ss:$8 sps:$4 sm:$0xff]   ;;  %v1183_v12 = vld [vmem:[%s1677_s1 + $0x230] ss:$8 sps:$4 sm:$0xff]  }
  0x19   :  { %688 = vmatprep.mubr.bf16.mxu1 %v27_v0  ;;  %v31_v8 = vpack.c.bf16 %v24_v6, %v24_v6  ;;  %v1234_v10 = vld [vmem:[%s1677_s1 + $0xe4] ss:$8 sps:$4 sm:$0xff]   ;;  %v1236_v14 = vld [vmem:[%s1677_s1 + $0xe0] ss:$8 sps:$4 sm:$0xff]   ;;  %v1240_v15 = vld [vmem:[%s1677_s1 + $0xf4] ss:$8 sps:$4 sm:$0xff]  }
  0x1a   :  { %v1191_v13 = vld [vmem:[%s1677_s1 + $0x244] ss:$8 sps:$4 sm:$0xff]   ;;  %v1242_v16 = vld [vmem:[%s1677_s1 + $0xf0] ss:$8 sps:$4 sm:$0xff]   ;;  %v1197_v20 = vld [vmem:[%s1677_s1 + $0x254] ss:$8 sps:$4 sm:$0xff]  }
  0x1b   :  { %710 = vmatpush1.bf16.msra.mxu0 %v1128_v17  ;;  %667 = vmatpush1.bf16.msra.mxu1 %v1182_v35  ;;  %v19_v17 = vld [vmem:[%s1678_s0] sm:$0xff]  ;;  %v25_v28 = vld [vmem:[%s1678_s0 + $0x30] sm:$0xff]  ;;  %v1259_v35 = vld [vmem:[%s1679_s2 + $0x8] sm:$0xff]  }
  0x1c   :  { %711 = vmatprep.subr.bf16.mxu0 %v1129_v18  ;;  %668 = vmatprep.subr.bf16.mxu1 %v1186_v36  ;;  %v1189_v18 = vld [vmem:[%s1677_s1 + $0x240] ss:$8 sps:$4 sm:$0xff]   ;;  %v1248_v19 = vld [vmem:[%s1677_s1 + $0x304] ss:$8 sps:$4 sm:$0xff]   ;;  %v26_v21 = vpack.c.bf16 %v19_v17, %v19_v17  ;;  %v32_v31 = vpack.c.bf16 %v25_v28, %v25_v28  ;;  %v1257_v55 = vld [vmem:[%s1677_s1 + $0x2f4] ss:$8 sps:$4 sm:$0xff]  }
  0x1d   :  { %v1246_v22 = vld [vmem:[%s1677_s1 + $0x300] ss:$8 sps:$4 sm:$0xff]   ;;  %v1203_v25 = vld [vmem:[%s1677_s1 + $0x264] ss:$8 sps:$4 sm:$0xff]   ;;  %v1268_v61 = vld [vmem:[%s1679_s2 + $0x50] sm:$0xff]  }
  0x1e   :  { %v1258_v32 = vld [vmem:[%s1679_s2] sm:$0xff]  }
  0x1f   :  { %712 = vmatpush1.bf16.msra.mxu0 %v1131_v23  ;;  %669 = vmatpush1.bf16.msra.mxu1 %v1188_v39  ;;  %v1195_v23 = vld [vmem:[%s1677_s1 + $0x250] ss:$8 sps:$4 sm:$0xff]   ;;  %v1213_v36 = vld [vmem:[%s1677_s1 + $0x280] ss:$8 sps:$4 sm:$0xff]  }
  0x20   :  { %713 = vmatprep.subr.bf16.mxu0 %v1132_v24  ;;  %670 = vmatprep.subr.bf16.mxu1 %v1192_v40  ;;  %v1254_v24 = vld [vmem:[%s1677_s1 + $0x314] ss:$8 sps:$4 sm:$0xff]   ;;  %v1219_v39 = vld [vmem:[%s1677_s1 + $0x290] ss:$8 sps:$4 sm:$0xff]   ;;  %v1227_v40 = vld [vmem:[%s1677_s1 + $0x2a4] ss:$8 sps:$4 sm:$0xff]  }
  0x23   :  { %714 = vmatpush1.bf16.msra.mxu0 %v1134_v26  ;;  %671 = vmatpush1.bf16.msra.mxu1 %v1194_v43  ;;  %v1252_v26 = vld [vmem:[%s1677_s1 + $0x310] ss:$8 sps:$4 sm:$0xff]   ;;  %v1233_v43 = vld [vmem:[%s1677_s1 + $0x2b4] ss:$8 sps:$4 sm:$0xff]  }
  0x24   :  { %715 = vmatprep.subr.bf16.mxu0 %v1135_v29  ;;  %672 = vmatprep.subr.bf16.mxu1 %v1198_v44  ;;  %v1201_v29 = vld [vmem:[%s1677_s1 + $0x260] ss:$8 sps:$4 sm:$0xff]  }
  0x25   :  { %v1262_v44 = vld [vmem:[%s1679_s2 + $0x20] sm:$0xff]  }
  0x27   :  { %716 = vmatpush1.bf16.msra.mxu0 %v1137_v30  ;;  %673 = vmatpush1.bf16.msra.mxu1 %v1200_v47  ;;  %v1209_v30 = vld [vmem:[%s1677_s1 + $0x274] ss:$8 sps:$4 sm:$0xff]   ;;  %v1263_v47 = vld [vmem:[%s1679_s2 + $0x28] sm:$0xff]  }
  0x28   :  { %717 = vmatprep.subr.bf16.mxu0 %v1138_v33  ;;  %674 = vmatprep.subr.bf16.mxu1 %v1204_v48  ;;  %v1207_v33 = vld [vmem:[%s1677_s1 + $0x270] ss:$8 sps:$4 sm:$0xff]   ;;  %v1237_v48 = vld [vmem:[%s1677_s1 + $0x2c0] ss:$8 sps:$4 sm:$0xff]  }
  0x2b   :  { %718 = vmatpush1.bf16.msra.mxu0 %v1140_v34  ;;  %675 = vmatpush1.bf16.msra.mxu1 %v1206_v51  ;;  %v1215_v34 = vld [vmem:[%s1677_s1 + $0x284] ss:$8 sps:$4 sm:$0xff]   ;;  %v1243_v51 = vld [vmem:[%s1677_s1 + $0x2d0] ss:$8 sps:$4 sm:$0xff]  }
  0x2c   :  { %719 = vmatprep.subr.bf16.mxu0 %v1141_v37  ;;  %676 = vmatprep.subr.bf16.mxu1 %v1210_v52  ;;  %v1221_v37 = vld [vmem:[%s1677_s1 + $0x294] ss:$8 sps:$4 sm:$0xff]   ;;  %v1251_v52 = vld [vmem:[%s1677_s1 + $0x2e4] ss:$8 sps:$4 sm:$0xff]  }
  0x2f   :  { %720 = vmatpush1.bf16.msra.mxu0 %v1143_v38  ;;  %677 = vmatpush1.bf16.msra.mxu1 %v1212_v56  ;;  %v1260_v38 = vld [vmem:[%s1679_s2 + $0x10] sm:$0xff]  }
  0x30   :  { %721 = vmatprep.subr.bf16.mxu0 %v1144_v41  ;;  %678 = vmatprep.subr.bf16.mxu1 %v1216_v57  ;;  %v1261_v41 = vld [vmem:[%s1679_s2 + $0x18] sm:$0xff]   ;;  %v23_v57 = vld [vmem:[%s1678_s0 + $0x20] sm:$0xff] }
  0x31   :  { %v1255_v56 = vld [vmem:[%s1677_s1 + $0x2f0] ss:$8 sps:$4 sm:$0xff]  }
  0x33   :  { %722 = vmatpush1.bf16.msra.mxu0 %v1146_v42  ;;  %679 = vmatpush1.bf16.msra.mxu1 %v1218_v60  ;;  %v1225_v42 = vld [vmem:[%s1677_s1 + $0x2a0] ss:$8 sps:$4 sm:$0xff]  }
  0x34   :  { %723 = vmatprep.subr.bf16.mxu0 %v1147_v45  ;;  %680 = vmatprep.subr.bf16.mxu1 %v1222_v63  ;;  %v1231_v45 = vld [vmem:[%s1677_s1 + $0x2b0] ss:$8 sps:$4 sm:$0xff]   ;;  %v1267_v60 = vld [vmem:[%s1679_s2 + $0x48] sm:$0xff]   ;;  %v1270_v63 = vld [vmem:[%s1679_s2 + $0x60] ss:$0 sps:$4 sm:$0xff]  }
  0x35   :  { %v934_v0 = vsel %vm932_vm1, %v1270_v63, 0 }
  0x37   :  { %724 = vmatpush1.bf16.msra.mxu0 %v1149_v46  ;;  %681 = vmatpush1.bf16.msra.mxu1 %v1224_v2  ;;  %v1239_v46 = vld [vmem:[%s1677_s1 + $0x2c4] ss:$8 sps:$4 sm:$0xff]  }
  0x38   :  { %725 = vmatprep.subr.bf16.mxu0 %v1153_v49  ;;  %682 = vmatprep.subr.bf16.mxu1 %v1228_v4  ;;  %v1245_v49 = vld [vmem:[%s1677_s1 + $0x2d4] ss:$8 sps:$4 sm:$0xff]  }
  0x3b   :  { %726 = vmatpush1.bf16.msra.mxu0 %v1155_v50  ;;  %683 = vmatpush1.bf16.msra.mxu1 %v1230_v9  ;;  %v1264_v50 = vld [vmem:[%s1679_s2 + $0x30] sm:$0xff]   ;;  %v134_v9 = vlaneseq }
  0x3c   :  { %727 = vmatprep.subr.bf16.mxu0 %v1159_v53  ;;  %684 = vmatprep.subr.bf16.mxu1 %v1234_v10  ;;  %v1265_v53 = vld [vmem:[%s1679_s2 + $0x38] sm:$0xff]  }
  0x3d   :  { %v135_v10 = vshrl.u32 %v134_v9, 7 }
  0x3f   :  { %728 = vmatpush1.bf16.msra.mxu0 %v1161_v54  ;;  %685 = vmatpush1.bf16.msra.mxu1 %v1236_v14  ;;  %v1249_v54 = vld [vmem:[%s1677_s1 + $0x2e0] ss:$8 sps:$4 sm:$0xff]  }
  0x40   :  { %738 = vmatprep.subr.bf16.mxu0 %v1167_v58  ;;  %686 = vmatprep.subr.bf16.mxu1 %v1240_v15  ;;  %v30_v58 = vpack.c.bf16 %v23_v57, %v23_v57 }
  0x42   :  { %730 = vmatmul.mubr.bf16.vlgmr.msra.gmra.mrb[0].mxu0 %v28_v59  ;;  %v1266_v59 = vld [vmem:[%s1679_s2 + $0x40] sm:$0xff]  }
  0x43   :  { %739 = vmatpush1.bf16.msra.mxu0 %v1165_v62  ;;  %770 = vmatprep.mubr.bf16.mxu0 %v31_v8  ;;  %v1269_v62 = vld [vmem:[%s1679_s2 + $0x58] sm:$0xff]  }
  0x44   :  { %740 = vmatprep.subr.bf16.mxu0 %v1173_v1  ;;  %687 = vmatpush1.bf16.msra.mxu1 %v1242_v16 }
  0x45   :  { %779 = vmatprep.subr.bf16.mxu1 %v1248_v19 }
  0x47   :  { %741 = vmatpush1.bf16.msra.mxu0 %v1171_v3  ;;  %689 = vmatmul.mubr.bf16.vlgmr.msra.gmra.mrb[0].mxu1 %v26_v21 }
  0x48   :  { %742 = vmatprep.subr.bf16.mxu0 %v1179_v5  ;;  %780 = vmatpush1.bf16.msra.mxu1 %v1246_v22 }
  0x49   :  { %811 = vmatprep.mubr.bf16.mxu1 %v1271_v27  ;;  %781 = vmatprep.subr.bf16.mxu1 %v1254_v24 }
  0x4b   :  { %743 = vmatpush1.bf16.msra.mxu0 %v1177_v7 }
  0x4c   :  { %744 = vmatprep.subr.bf16.mxu0 %v1185_v11  ;;  %782 = vmatpush1.bf16.msra.mxu1 %v1252_v26  ;;  %v136_v11 = vsub.s32 0, %v135_v10 }
  0x4d   :  { %936 = vmatprep.subr.bf16.mxu1 %v1271_v27 }
  0x4f   :  { %745 = vmatpush1.bf16.msra.mxu0 %v1183_v12  ;;  %1082 = vmatmul.mubr.msk.bf16.vlgmr.msra.gmra.mrb[4].mxu1 %vm652_vm0, %v32_v31  ;;  %v18_v12 = vld [vmem:[%s1680_s3] sm:$0xf] }
  0x50   :  { %746 = vmatprep.subr.bf16.mxu0 %v1191_v13  ;;  %937 = vmatpush1.bf16.msra.mxu1 %v1258_v32  ;;  %v140_v13 = vsub.s32 2, %v135_v10  ;;  %v137_v14 = vrot.slane %v18_v12, %v136_v11  ;;  %v851_v32 = vsub.s32 1, %v135_v10 }
  0x51   :  { %938 = vmatprep.subr.bf16.mxu1 %v1271_v27 }
  0x52   :  { %v141_v15 = vrot.slane %v18_v12, %v140_v13  ;;  %v147_v16 = vrot.slane %v137_v14, %v136_v11 }
  0x53   :  { %747 = vmatpush1.bf16.msra.mxu0 %v1189_v18 }
  0x54   :  { %748 = vmatprep.subr.bf16.mxu0 %v1197_v20  ;;  %939 = vmatpush1.bf16.msra.mxu1 %v1259_v35  ;;  %v151_v17 = vrot.slane %v141_v15, %v136_v11 }
  0x55   :  { %940 = vmatprep.subr.bf16.mxu1 %v1271_v27 }
  0x57   :  { %749 = vmatpush1.bf16.msra.mxu0 %v1195_v23 }
  0x58   :  { %750 = vmatprep.subr.bf16.mxu0 %v1203_v25  ;;  %941 = vmatpush1.bf16.msra.mxu1 %v1260_v38 }
  0x59   :  { %942 = vmatprep.subr.bf16.mxu1 %v1271_v27 }
  0x5b   :  { %751 = vmatpush1.bf16.msra.mxu0 %v1201_v29 }
  0x5c   :  { %752 = vmatprep.subr.bf16.mxu0 %v1209_v30  ;;  %943 = vmatpush1.bf16.msra.mxu1 %v1261_v41 }
  0x5d   :  { %944 = vmatprep.subr.bf16.mxu1 %v1271_v27 }
  0x5f   :  { %753 = vmatpush1.bf16.msra.mxu0 %v1207_v33  ;;  %v852_v33 = vrot.slane %v18_v12, %v851_v32 }
  0x60   :  { %754 = vmatprep.subr.bf16.mxu0 %v1215_v34  ;;  %945 = vmatpush1.bf16.msra.mxu1 %v1262_v44 }
  0x61   :  { %946 = vmatprep.subr.bf16.mxu1 %v1271_v27 }
  0x63   :  { %755 = vmatpush1.bf16.msra.mxu0 %v1213_v36 }
  0x64   :  { %756 = vmatprep.subr.bf16.mxu0 %v1221_v37  ;;  %947 = vmatpush1.bf16.msra.mxu1 %v1263_v47 }
  0x65   :  { %948 = vmatprep.subr.bf16.mxu1 %v1271_v27 }
  0x67   :  { %757 = vmatpush1.bf16.msra.mxu0 %v1219_v39 }
  0x68   :  { %758 = vmatprep.subr.bf16.mxu0 %v1227_v40  ;;  %949 = vmatpush1.bf16.msra.mxu1 %v1264_v50 }
  0x69   :  { %950 = vmatprep.subr.bf16.mxu1 %v1271_v27 }
  0x6b   :  { %759 = vmatpush1.bf16.msra.mxu0 %v1225_v42 }
  0x6c   :  { %760 = vmatprep.subr.bf16.mxu0 %v1233_v43  ;;  %951 = vmatpush1.bf16.msra.mxu1 %v1265_v53 }
  0x6d   :  { %952 = vmatprep.subr.bf16.mxu1 %v1271_v27 }
  0x6f   :  { %761 = vmatpush1.bf16.msra.mxu0 %v1231_v45 }
  0x70   :  { %762 = vmatprep.subr.bf16.mxu0 %v1239_v46  ;;  %953 = vmatpush1.bf16.msra.mxu1 %v1266_v59 }
  0x71   :  { %954 = vmatprep.subr.bf16.mxu1 %v1271_v27 }
  0x73   :  { %763 = vmatpush1.bf16.msra.mxu0 %v1237_v48 }
  0x74   :  { %764 = vmatprep.subr.bf16.mxu0 %v1245_v49  ;;  %955 = vmatpush1.bf16.msra.mxu1 %v1267_v60 }
  0x75   :  { %956 = vmatprep.subr.bf16.mxu1 %v1271_v27 }
  0x77   :  { %765 = vmatpush1.bf16.msra.mxu0 %v1243_v51 }
  0x78   :  { %766 = vmatprep.subr.bf16.mxu0 %v1251_v52  ;;  %957 = vmatpush1.bf16.msra.mxu1 %v1268_v61 }
  0x79   :  { %958 = vmatprep.subr.bf16.mxu1 %v1271_v27 }
  0x7b   :  { %767 = vmatpush1.bf16.msra.mxu0 %v1249_v54 }
  0x7c   :  { %768 = vmatprep.subr.bf16.mxu0 %v1257_v55  ;;  %959 = vmatpush1.bf16.msra.mxu1 %v1269_v62 }
  0x7d   :  { %960 = vmatprep.subr.bf16.mxu1 %v1271_v27 }
  0x7f   :  { %769 = vmatpush1.bf16.msra.mxu0 %v1255_v56 }
  0x80   :  { %961 = vmatpush1.bf16.msra.mxu1 %v934_v0 }
  0x82   :  { %771 = vmatmul.mubr.bf16.vlgmr.msra.gmra.mrb[0].mxu0 %v30_v58 }
 0x11a   :  { %v690_v1 = vpop.f32.mrb[0].mxu1 }
 0x11b   :  { %v692_v2 = vpop.f32.mrb[1].mxu1  ;;  %v691_v18 = vadd.f32 %v690_v1, %v147_v16 }
 0x11c   :  { %v694_v3 = vpop.f32.mrb[2].mxu1  ;;  %v693_v19 = vadd.f32 %v692_v2, %v151_v17 }
 0x11d   :  { %v695_v4 = vpop.f32.mrb[3].mxu1 }
 0x122   :  { %v813_v5 = vpop.f32.mrb[4].mxu1 }
 0x123   :  { %v815_v6 = vpop.f32.mrb[5].mxu1 }
 0x124   :  { %v817_v7 = vpop.f32.mrb[6].mxu1 }
 0x125   :  { %v818_v8 = vpop.f32.mrb[7].mxu1 }
 0x155   :  { %v772_v20 = vpop.f32.mrb[0].mxu0 }
 0x156   :  { %v1098_v21 = vadd.f32 %v772_v20, %v691_v18  ;;  %v774_v22 = vpop.f32.mrb[1].mxu0 }
 0x157   :  { %v1101_v23 = vadd.f32 %v774_v22, %v693_v19  ;;  %v776_v24 = vpop.f32.mrb[2].mxu0 }
 0x158   :  { %v1099_v25 = vadd.f32 %v1098_v21, %v813_v5  ;;  %v777_v26 = vpop.f32.mrb[3].mxu0 }
 0x159   :  { %v1102_v27 = vadd.f32 %v1101_v23, %v815_v6 }
 0x15a   :  { %v820_v28 = vmax.f32 %v1099_v25, 0.0 }
 0x15b   :  { %v821_v29 = vmax.f32 %v1102_v27, 0.0 }
 0x15c   :  { %v822_v31 = vpack.c.bf16 %v820_v28, %v820_v28 }
 0x15d   :  { %v823_v30 = vpack.c.bf16 %v821_v29, %v821_v29 }
 0x15f   :  { %1096 = vmatprep.mubr.msk.bf16.mxu1 %vm928_vm2, %v823_v30 }
 0x160   :  { %969 = vmatmul.mubr.bf16.vlgmr.msra.gmra.mrb[8].mxu1 %v822_v31 }
 0x233   :  { %v970_v34 = vpop.f32.mrb[8].mxu1 }
 0x234   :  { %v971_v35 = vadd.f32 %v970_v34, %v852_v33  ;;  %v972_v36 = vpop.f32.mrb[9].mxu1 }
 0x235   :  { %v973_v37 = vpop.f32.mrb[10].mxu1 }
 0x236   :  { %977 = vst.msk [vmem:[%s1681_s4] sm:$0xff] %vm976_vm3, %v971_v35  ;;  %v974_v38 = vpop.f32.mrb[11].mxu1 }

</bundles_post_ra>
